<compile_context>
chip_gen: v5e
topology: v5e:2x2
jax: 0.10.0
libtpu: 0.0.40
codegen_flags: <defaults>
</compile_context>

<pallas_src>
import functools

import jax
import jax.numpy as jnp
from jax import lax
from jax.experimental import pallas as pl
from jax.experimental.pallas import tpu as pltpu


def _round8(n):
    return -(-n // 8) * 8


def make_layout(B, C, N, L):
    """Row layout of the packed parameter slab. Every block starts at a
    sublane-aligned (multiple-of-8) row; lane dim is padded to >=128."""
    blocks = [
        ("m12", C * L, L),        # W1 (outer) W2^T, flattened over (c, l')
        ("m3", C * L, L),         # w3[c] * I_L,      flattened over (c, l')
        ("scale1", B * N, L),     # folded bn_w1*bn_w2 scale, tiled over batch
        ("shift1", B * N, L),
        ("scale2", B * N, L),     # folded bn_w3 scale, tiled over batch
        ("shift2", B * N, L),
        ("vwt", N, N),            # V.weight^T
        ("vb", 1, N),             # V.bias
    ]
    layout = {}
    off = 0
    max_cols = 0
    for name, rows, cols in blocks:
        layout[name] = (off, rows, cols)
        off += _round8(rows)
        max_cols = max(max_cols, cols)
    total_rows = _round8(off)
    lanes = max(128, -(-max_cols // 128) * 128)
    return layout, total_rows, lanes


def spatial_attention_kernel(x_ref, slab_ref, out_ref, *, B, C, N, L, layout):
    """Whole batch in one invocation.

    x_ref:    (B*N, C*L)  x transposed to (B, N, C, L) and flattened (lane-denser rows).
    slab_ref: (rows, 128) packed parameter slab (see make_layout).
    out_ref:  (B*N, N)    softmax attention rows (caller reshapes to (B, N, N)).
    """
    BN = B * N

    def view(name):
        off, rows, cols = layout[name]
        return slab_ref[off:off + rows, 0:cols]

    m12 = view("m12")                       # (C*L, L)
    m3 = view("m3")                         # (C*L, L)
    sc1, sh1 = view("scale1"), view("shift1")   # (B*N, L)
    sc2, sh2 = view("scale2"), view("shift2")   # (B*N, L)
    vwt = view("vwt")                       # (N, N)
    vb = view("vb")                         # (1, N)

    x = x_ref[...]                          # (B*N, C*L)

    # Stage 1: channel sum happens as the K-contraction inside the MXU.
    # part1 = bn_w2(W2(bn_w1(W1 x)));  part2 = bn_w3(W3 x)   (BN affines folded).
    part1 = jnp.dot(x, m12, preferred_element_type=jnp.float32) * sc1 + sh1  # (B*N, L)
    part2 = jnp.dot(x, m3, preferred_element_type=jnp.float32) * sc2 + sh2   # (B*N, L)

    # score[b] = part1[b] @ part2[b]^T  (batched over b).
    score = jnp.einsum(
        "bnl,bml->bnm",
        part1.reshape(B, N, L), part2.reshape(B, N, L),
        preferred_element_type=jnp.float32)                                  # (B, N, N)
    score = score.reshape(BN, N)

    score = jnp.where(score > 0, score, 0.01 * score)                        # LeakyReLU
    score = jnp.dot(score, vwt, preferred_element_type=jnp.float32) + vb     # V linear
    score = jnp.clip(score, -10.0, 10.0)

    # Softmax. |score| <= 10 after the clip, so exp is bounded and the row-max
    # subtraction can be dropped. Exact divide keeps row sums == 1 to f32 rounding.
    e = jnp.exp(score)
    denom = jnp.sum(e, axis=-1, keepdims=True)
    out_ref[...] = e / denom


def fold_params(p, B):
    """Host-side precompute: fold eval-mode BatchNorm affines into the linears and
    pack everything into a single lane-dense f32 slab."""
    w1 = p["w1"].astype(jnp.float32)            # (L,)   W1.weight
    w2 = p["w2"].astype(jnp.float32)            # (L, C) W2.weight
    w3 = p["w3"].astype(jnp.float32)            # (C,)   W3.weight
    L = w1.shape[0]
    C = w3.shape[0]
    N = p["vw"].shape[0]

    # m12[c*L + l', l] = w1[l'] * W2.weight[l, c]   (branch 1 fused weight)
    m12 = (w1[None, :, None] * w2.T[:, None, :]).reshape(C * L, L)
    # m3[c*L + l', l]  = w3[c] * (l' == l)          (branch 2 fused weight)
    m3 = (w3[:, None, None] * jnp.eye(L, dtype=jnp.float32)[None]).reshape(C * L, L)

    # part1 = (s1*s2)*raw1 + (s2*b1*colsum(W2) + b2);  part2 = s3*raw2 + b3
    scale1 = jnp.broadcast_to((p["s1"] * p["s2"])[:, None], (N, L))
    cw2 = jnp.sum(w2, axis=1)[None, :]                                   # (1, L)
    shift1 = p["s2"][:, None] * p["b1"][:, None] * cw2 + p["b2"][:, None]
    scale2 = jnp.broadcast_to(p["s3"][:, None], (N, L))
    shift2 = jnp.broadcast_to(p["b3"][:, None], (N, L))

    vwt = p["vw"].astype(jnp.float32).T                                  # (N, N)
    vb = p["vb"].astype(jnp.float32)[None, :]                            # (1, N)

    layout, total_rows, lanes = make_layout(B, C, N, L)
    slab = jnp.zeros((total_rows, lanes), jnp.float32)
    tile_b = lambda a: jnp.tile(a, (B, 1))
    vals = {
        "m12": m12, "m3": m3,
        "scale1": tile_b(scale1), "shift1": tile_b(shift1),
        "scale2": tile_b(scale2), "shift2": tile_b(shift2),
        "vwt": vwt, "vb": vb,
    }
    for name, arr in vals.items():
        off, rows, cols = layout[name]
        slab = slab.at[off:off + rows, 0:cols].set(arr.astype(jnp.float32))
    return slab


@functools.partial(jax.jit, static_argnames=("B", "C", "N", "L"))
def _spatial_attention(x, slab, B, C, N, L):
    layout, _, _ = make_layout(B, C, N, L)
    # Lane-denser input layout for the merged stage-1 matmul: (B, C, N, L) ->
    # (B, N, C, L) -> (B*N, C*L).  The transpose is tiny and done once here.
    x_flat = jnp.transpose(x.astype(jnp.float32), (0, 2, 1, 3)).reshape(B * N, C * L)
    kernel = functools.partial(spatial_attention_kernel,
                               B=B, C=C, N=N, L=L, layout=layout)
    vmem = lambda: pl.BlockSpec(memory_space=pltpu.MemorySpace.VMEM)
    out = pl.pallas_call(
        kernel,
        out_shape=jax.ShapeDtypeStruct((B * N, N), jnp.float32),
        in_specs=[vmem(), vmem()],
        out_specs=vmem(),
    )(x_flat, slab)
    return out.reshape(B, N, N)


def spatial_attention_pallas(x, slab):
    """x: (B, in_features, num_nodes, in_len) in the original PyTorch layout."""
    B, C, N, L = x.shape
    return _spatial_attention(x, slab, B=B, C=C, N=N, L=L)


def init_params(key, num_nodes, in_features, in_len):
    """PyTorch-default-style init; BN given non-trivial eval-mode scale/shift so the
    host-side folding is actually exercised."""
    N, C, L = num_nodes, in_features, in_len
    ks = jax.random.split(key, 11)
    u = lambda k, shape, fan_in: jax.random.uniform(
        k, shape, jnp.float32, -1.0 / jnp.sqrt(fan_in), 1.0 / jnp.sqrt(fan_in))
    return {
        "w1": u(ks[0], (L,), L),        # Linear(in_len, 1, bias=False).weight
        "w2": u(ks[1], (L, C), C),      # Linear(in_features, in_len, bias=False).weight
        "w3": u(ks[2], (C,), C),        # Linear(in_features, 1, bias=False).weight
        "vw": u(ks[3], (N, N), N),      # Linear(num_nodes, num_nodes).weight
        "vb": u(ks[4], (N,), N),        # Linear(num_nodes, num_nodes).bias
        # eval-mode BN folded per-node affine: s = gamma/sqrt(var+eps), b = beta - mean*s
        "s1": jax.random.uniform(ks[5], (N,), jnp.float32, 0.5, 1.5),
        "b1": 0.1 * jax.random.normal(ks[6], (N,), jnp.float32),
        "s2": jax.random.uniform(ks[7], (N,), jnp.float32, 0.5, 1.5),
        "b2": 0.1 * jax.random.normal(ks[8], (N,), jnp.float32),
        "s3": jax.random.uniform(ks[9], (N,), jnp.float32, 0.5, 1.5),
        "b3": 0.1 * jax.random.normal(ks[10], (N,), jnp.float32),
    }


def spatial_attention_ref(x, p):
    """Pure-JAX reference mirroring the PyTorch forward (eval-mode BatchNorm)."""
    hi = lax.Precision.HIGHEST
    x = x.astype(jnp.float32)
    part1_in = jnp.transpose(x, (0, 2, 1, 3))   # (B, N, C, L)
    part2_in = jnp.transpose(x, (0, 2, 3, 1))   # (B, N, L, C)

    q1 = jnp.einsum("bncl,l->bnc", part1_in, p["w1"], precision=hi)
    q1 = q1 * p["s1"][None, :, None] + p["b1"][None, :, None]          # bn_w1
    q2 = jnp.einsum("bnc,lc->bnl", q1, p["w2"], precision=hi)
    part1 = q2 * p["s2"][None, :, None] + p["b2"][None, :, None]       # bn_w2

    q3 = jnp.einsum("bnlc,c->bnl", part2_in, p["w3"], precision=hi)
    part2 = q3 * p["s3"][None, :, None] + p["b3"][None, :, None]       # bn_w3

    score = jnp.einsum("bnl,bml->bnm", part1, part2, precision=hi)     # bmm
    score = jnp.where(score > 0, score, 0.01 * score)                  # LeakyReLU
    score = jnp.einsum("bnm,km->bnk", score, p["vw"], precision=hi) + p["vb"][None, None, :]
    score = jnp.clip(score, -10.0, 10.0)
    return jax.nn.softmax(score, axis=-1)


if __name__ == "__main__":
    # Shapes implied by the module: batch=2, in_features=4, num_nodes=16, in_len=8.
    B, C, N, L = 2, 4, 16, 8
    key = jax.random.PRNGKey(0)
    kx, kp = jax.random.split(key)
    x = jax.random.normal(kx, (B, C, N, L), jnp.float32)   # PyTorch layout (B, C, N, L)

    raw = init_params(kp, num_nodes=N, in_features=C, in_len=L)
    slab = fold_params(raw, B)

    out = jax.block_until_ready(spatial_attention_pallas(x, slab))
    ref = jax.block_until_ready(spatial_attention_ref(x, raw))

    assert out.shape == (B, N, N)
    max_err = float(jnp.max(jnp.abs(out - ref)))
    assert bool(jnp.allclose(out, ref, atol=2e-3, rtol=2e-3)), (
        "mismatch vs JAX reference: max abs err = " + str(max_err))
    rowsum_err = float(jnp.max(jnp.abs(jnp.sum(out, axis=-1) - 1.0)))
    assert bool(jnp.allclose(jnp.sum(out, axis=-1), 1.0, atol=1e-4)), (
        "softmax rows must sum to ~1: max err = " + str(rowsum_err))
    print("KERNEL_OK")
</pallas_src>

<mosaic_0001>
module attributes {stable_mosaic.version = 11 : i64} {
  func.func @spatial_attention_kernel(%arg0: memref<32x32xf32, #tpu.memory_space<vmem>>, %arg1: memref<216x128xf32, #tpu.memory_space<vmem>>, %arg2: memref<32x16xf32, #tpu.memory_space<vmem>>) attributes {dimension_semantics = [], scalar_prefetch = 0 : i64, scratch_operands = 0 : i64, tpu.core_type = #tpu.core_type<tc>} {
    %c0 = arith.constant 0 : index
    %c0_0 = arith.constant 0 : index
    %0 = vector.load %arg1[%c0, %c0_0] : memref<216x128xf32, #tpu.memory_space<vmem>>, vector<32x8xf32>
    %c32 = arith.constant 32 : index
    %c0_1 = arith.constant 0 : index
    %1 = vector.load %arg1[%c32, %c0_1] : memref<216x128xf32, #tpu.memory_space<vmem>>, vector<32x8xf32>
    %c64 = arith.constant 64 : index
    %c0_2 = arith.constant 0 : index
    %2 = vector.load %arg1[%c64, %c0_2] : memref<216x128xf32, #tpu.memory_space<vmem>>, vector<32x8xf32>
    %c96 = arith.constant 96 : index
    %c0_3 = arith.constant 0 : index
    %3 = vector.load %arg1[%c96, %c0_3] : memref<216x128xf32, #tpu.memory_space<vmem>>, vector<32x8xf32>
    %c128 = arith.constant 128 : index
    %c0_4 = arith.constant 0 : index
    %4 = vector.load %arg1[%c128, %c0_4] : memref<216x128xf32, #tpu.memory_space<vmem>>, vector<32x8xf32>
    %c160 = arith.constant 160 : index
    %c0_5 = arith.constant 0 : index
    %5 = vector.load %arg1[%c160, %c0_5] : memref<216x128xf32, #tpu.memory_space<vmem>>, vector<32x8xf32>
    %c192 = arith.constant 192 : index
    %c0_6 = arith.constant 0 : index
    %6 = vector.load %arg1[%c192, %c0_6] : memref<216x128xf32, #tpu.memory_space<vmem>>, vector<16x16xf32>
    %c208 = arith.constant 208 : index
    %c0_7 = arith.constant 0 : index
    %7 = vector.load %arg1[%c208, %c0_7] : memref<216x128xf32, #tpu.memory_space<vmem>>, vector<1x16xf32>
    %c0_8 = arith.constant 0 : index
    %c0_9 = arith.constant 0 : index
    %8 = vector.load %arg0[%c0_8, %c0_9] : memref<32x32xf32, #tpu.memory_space<vmem>>, vector<32x32xf32>
    %cst = arith.constant dense<0.000000e+00> : vector<32x8xf32>
    %9 = tpu.matmul %8, %0, %cst {dimension_numbers = #tpu.dot_dimension_numbers<[1], [0], [0], [1], [0, 0, 1, 1], [], []>} : vector<32x32xf32>, vector<32x8xf32>, vector<32x8xf32> -> vector<32x8xf32>
    %10 = arith.mulf %9, %2 : vector<32x8xf32>
    %11 = arith.addf %10, %3 : vector<32x8xf32>
    %cst_10 = arith.constant dense<0.000000e+00> : vector<32x8xf32>
    %12 = tpu.matmul %8, %1, %cst_10 {dimension_numbers = #tpu.dot_dimension_numbers<[1], [0], [0], [1], [0, 0, 1, 1], [], []>} : vector<32x32xf32>, vector<32x8xf32>, vector<32x8xf32> -> vector<32x8xf32>
    %13 = arith.mulf %12, %4 : vector<32x8xf32>
    %14 = arith.addf %13, %5 : vector<32x8xf32>
    %15 = vector.shape_cast %11 : vector<32x8xf32> to vector<2x16x8xf32>
    %16 = vector.shape_cast %14 : vector<32x8xf32> to vector<2x16x8xf32>
    "tpu.trace_start"() <{level = 10 : i32, message = "bnl,bml->bnm"}> : () -> ()
    %cst_11 = arith.constant dense<0.000000e+00> : vector<2x16x16xf32>
    %17 = tpu.matmul %15, %16, %cst_11 {dimension_numbers = #tpu.dot_dimension_numbers<[2], [2], [1], [1], [0, 0, 0, 1, 1, 1], [0], [0]>} : vector<2x16x8xf32>, vector<2x16x8xf32>, vector<2x16x16xf32> -> vector<2x16x16xf32>
    "tpu.trace_stop"() : () -> ()
    %18 = vector.shape_cast %17 : vector<2x16x16xf32> to vector<32x16xf32>
    %cst_12 = arith.constant 0.000000e+00 : f32
    %19 = vector.broadcast %cst_12 : f32 to vector<32x16xf32>
    %20 = arith.cmpf ogt, %18, %19 : vector<32x16xf32>
    %cst_13 = arith.constant 0.00999999977 : f32
    %21 = vector.broadcast %cst_13 : f32 to vector<32x16xf32>
    %22 = arith.mulf %21, %18 : vector<32x16xf32>
    %23 = arith.select %20, %18, %22 : vector<32x16xi1>, vector<32x16xf32>
    %cst_14 = arith.constant dense<0.000000e+00> : vector<32x16xf32>
    %24 = tpu.matmul %23, %6, %cst_14 {dimension_numbers = #tpu.dot_dimension_numbers<[1], [0], [0], [1], [0, 0, 1, 1], [], []>} : vector<32x16xf32>, vector<16x16xf32>, vector<32x16xf32> -> vector<32x16xf32>
    %25 = vector.broadcast %7 : vector<1x16xf32> to vector<32x16xf32>
    %26 = arith.addf %24, %25 : vector<32x16xf32>
    %cst_15 = arith.constant -1.000000e+01 : f32
    %cst_16 = arith.constant 1.000000e+01 : f32
    %27 = vector.broadcast %cst_15 : f32 to vector<32x16xf32>
    %28 = arith.maximumf %27, %26 : vector<32x16xf32>
    %29 = vector.broadcast %cst_16 : f32 to vector<32x16xf32>
    %30 = arith.minimumf %29, %28 : vector<32x16xf32>
    %31 = math.exp %30 : vector<32x16xf32>
    %cst_17 = arith.constant dense<0.000000e+00> : vector<32xf32>
    %32 = vector.multi_reduction <add>, %31, %cst_17 [1] : vector<32x16xf32> to vector<32xf32>
    %33 = vector.shape_cast %32 : vector<32xf32> to vector<32x1xf32>
    %34 = vector.broadcast %33 : vector<32x1xf32> to vector<32x16xf32>
    %35 = arith.divf %31, %34 : vector<32x16xf32>
    %c0_18 = arith.constant 0 : index
    %c0_19 = arith.constant 0 : index
    %36 = vector.load %arg2[%c0_18, %c0_19] : memref<32x16xf32, #tpu.memory_space<vmem>>, vector<32x16xf32>
    tpu.vector_store %arg2[%c0_18, %c0_19], %35 {strides = array<i32>} : memref<32x16xf32, #tpu.memory_space<vmem>>, vector<32x16xf32>,
    return
  }
}

</mosaic_0001>

<bundles_post_ra>
// kernel: _spatial_attention.1
= control target key start
LH: loop header
LB: loop body
LE: loop exit
PB: predicated region body
PF: predicated region fallthrough
CT: control target
= control target key end

     0   :  { %vm43_vm0 = vcmask 261120   ;;  %s586_s0 = inlined_call_operand.vmem [shape: f32[32,32], index: 0, kind: input, shape index: {}]   ;;  %s587_s1 = inlined_call_operand.vmem [shape: f32[216,128], index: 1, kind: input, shape index: {}]   ;;  %s588_s2 = inlined_call_operand.hbm [shape: f32[32,16], index: 2, kind: output, shape index: {}]  }
   0x1   :  { %v19_v0 = vld [vmem:[%s587_s1 + $0x38] sm:$0xff]  ;;  %v18_v1 = vld [vmem:[%s587_s1 + $0x30] sm:$0xff]  ;;  %v17_v3 = vld [vmem:[%s587_s1 + $0x28] sm:$0xff] }
   0x2   :  { %105 = vmatpush.msra.mxu1 %v19_v0  ;;  %v15_v2 = vld [vmem:[%s587_s1 + $0x18] sm:$0xff]  ;;  %v14_v4 = vld [vmem:[%s587_s1 + $0x10] sm:$0xff]  ;;  %v13_v5 = vld [vmem:[%s587_s1 + $0x8] sm:$0xff] }
   0x3   :  { %68 = vmatpush.msra.mxu0 %v15_v2  ;;  %v16_v6 = vld [vmem:[%s587_s1 + $0x20] sm:$0xff] }
   0x4   :  { %106 = vmatpush.msra.mxu1 %v18_v1  ;;  %v39_v7 = vld [vmem:[%s586_s0] sm:$0xff] }
   0x5   :  { %69 = vmatpush.msra.mxu0 %v14_v4  ;;  %v12_v8 = vld [vmem:[%s587_s1] sm:$0xff] }
   0x6   :  { %107 = vmatpush.msra.mxu1 %v17_v3 }
   0x7   :  { %7 = vsyncpa [#allocation3], 0  ;;  %70 = vmatpush.msra.mxu0 %v13_v5  ;;  %v40_v9 = vld [vmem:[%s586_s0 + $0x8] sm:$0xff]  ;;  %v41_v10 = vld [vmem:[%s586_s0 + $0x10] sm:$0xff]  ;;  %vm130_vm1 = vcmask 64512   ;;  %vm214_vm3 = vcmask 130048  }
   0x8   :  { %108 = vmatpush.msra.mxu1 %v16_v6  ;;  %v42_v11 = vld [vmem:[%s586_s0 + $0x18] sm:$0xff]  ;;  %v29_v14 = vld [vmem:[%s587_s1 + $0x88] sm:$0xff]  ;;  %v28_v15 = vld [vmem:[%s587_s1 + $0x80] sm:$0xff]  ;;  %s354_s16 = sshll.u32 %s588_s2, 4  ;;  %s437_s17 = smov 128   ;;  %s355_s16 = int_to_ptr.hbm [resolvable:$true] %s354_s16 }
   0x9   :  { %370 = vmatmul.msk.f32.vlgmr.msra.gmra.mxu1 %vm43_vm0, %v39_v7  ;;  %71 = vmatpush.msra.mxu0 %v12_v8  ;;  %v33_v17 = vld [vmem:[%s587_s1 + $0xa8] sm:$0xff]  ;;  %v20_v19 = vld [vmem:[%s587_s1 + $0x40] sm:$0xff]  ;;  %v31_v32 = vld [vmem:[%s587_s1 + $0x98] sm:$0xff]  ;;  %s438_s18 = smov 8  }
   0xa   :  { %366 = vmatmul.msk.f32.vlgmr.msra.gmra.mxu0 %vm43_vm0, %v39_v7  ;;  %v32_v22 = vld [vmem:[%s587_s1 + $0xa0] sm:$0xff]  ;;  %v21_v29 = vld [vmem:[%s587_s1 + $0x48] sm:$0xff]  ;;  %v30_v34 = vld [vmem:[%s587_s1 + $0x90] sm:$0xff] }
   0xb   :  { %v24_v24 = vld [vmem:[%s587_s1 + $0x60] sm:$0xff]  ;;  %v25_v31 = vld [vmem:[%s587_s1 + $0x68] sm:$0xff]  ;;  %v35_v36 = vld [vmem:[%s587_s1 + $0xb8] sm:$0xff] }
   0xc   :  { %v22_v39 = vld [vmem:[%s587_s1 + $0x50] sm:$0xff]  ;;  %v23_v47 = vld [vmem:[%s587_s1 + $0x58] sm:$0xff]  ;;  %v37_v52 = vld [vmem:[%s587_s1 + $0xc8] sm:$0xff] }
   0xd   :  { %v34_v42 = vld [vmem:[%s587_s1 + $0xb0] sm:$0xff]  ;;  %v27_v50 = vld [vmem:[%s587_s1 + $0x78] sm:$0xff]  ;;  %241 = vmatpush.msra.mxu2 %v37_v52  ;;  %v36_v53 = vld [vmem:[%s587_s1 + $0xc0] sm:$0xff] }
   0xe   :  { %v26_v44 = vld [vmem:[%s587_s1 + $0x70] sm:$0xff] }
   0xf   :  { %242 = vmatpush.msra.mxu2 %v36_v53  ;;  %v393_v2 = vld [vmem:[%s587_s1 + $0xd0] ss:$0 sm:$0xff]  ;;  %s436_s1 = smov [#allocation2]  }
  0x10   :  { %s352_s13 = sshll.u32 %s436_s1, 4  ;;  %s353_s13 = int_to_ptr.vmem [resolvable:$true] %s352_s13 }
  0x11   :  { %371 = vmatmul.msk.f32.gmra.mxu1 %vm43_vm0, %v40_v9 }
  0x12   :  { %367 = vmatmul.msk.f32.gmra.mxu0 %vm43_vm0, %v40_v9 }
  0x19   :  { %372 = vmatmul.msk.f32.gmra.mxu1 %vm43_vm0, %v41_v10 }
  0x1a   :  { %368 = vmatmul.msk.f32.gmra.mxu0 %vm43_vm0, %v41_v10 }
  0x21   :  { %373 = vmatmul.msk.f32.gmra.mxu1 %vm43_vm0, %v42_v11 }
  0x22   :  { %369 = vmatmul.msk.f32.gmra.mxu0 %vm43_vm0, %v42_v11 }
  0x86   :  { %v110_v12 = vpop.f32.mrf.mxu1 }
  0x87   :  { %v73_v13 = vpop.f32.mrf.mxu0  ;;  %v122_v20 = vmul.f32 %v110_v12, %v28_v15 }
  0x88   :  { %v85_v23 = vmul.f32 %v73_v13, %v20_v19 }
  0x89   :  { %v126_v26 = vadd.f32 %v122_v20, %v32_v22 }
  0x8a   :  { %v89_v27 = vadd.f32 %v85_v23, %v24_v24 }
  0x8e   :  { %v113_v16 = vpop.f32.mrf.mxu1 }
  0x8f   :  { %v123_v18 = vmul.f32 %v113_v16, %v29_v14  ;;  %v76_v25 = vpop.f32.mrf.mxu0 }
  0x90   :  { %v86_v30 = vmul.f32 %v76_v25, %v21_v29 }
  0x91   :  { %v127_v21 = vadd.f32 %v123_v18, %v33_v17 }
  0x92   :  { %v90_v35 = vadd.f32 %v86_v30, %v25_v31 }
  0x93   :  { %374 = vmatpush.xpose.msk.msra.mxu3 %vm130_vm1, %v127_v21 }
  0x96   :  { %v116_v28 = vpop.f32.mrf.mxu1 }
  0x97   :  { %375 = vmatpush.xpose.msk.msra.mxu3 %vm130_vm1, %v126_v26  ;;  %v79_v33 = vpop.f32.mrf.mxu0  ;;  %v124_v40 = vmul.f32 %v116_v28, %v30_v34 }
  0x98   :  { %v87_v43 = vmul.f32 %v79_v33, %v22_v39 }
  0x99   :  { %v128_v45 = vadd.f32 %v124_v40, %v34_v42 }
  0x9a   :  { %376 = vmatmul.msk.f32.vlgmr.msra.gmra.mxu3 %vm130_vm1, %v89_v27  ;;  %v91_v46 = vadd.f32 %v87_v43, %v26_v44 }
  0x9e   :  { %v119_v37 = vpop.f32.mrf.mxu1 }
  0x9f   :  { %v125_v38 = vmul.f32 %v119_v37, %v31_v32  ;;  %v82_v48 = vpop.f32.mrf.mxu0 }
  0xa0   :  { %v88_v49 = vmul.f32 %v82_v48, %v23_v47 }
  0xa1   :  { %v129_v41 = vadd.f32 %v125_v38, %v35_v36 }
  0xa2   :  { %377 = vmatmul.msk.f32.gmra.mxu3 %vm130_vm1, %v90_v35  ;;  %v92_v51 = vadd.f32 %v88_v49, %v27_v50 }
  0xa3   :  { %378 = vmatpush.xpose.msk.msrb.mxu3 %vm130_vm1, %v129_v41 }
  0xa7   :  { %379 = vmatpush.xpose.msk.msrb.mxu3 %vm130_vm1, %v128_v45 }
  0xaa   :  { %380 = vmatmul.msk.f32.vlgmr.msrb.gmra.mxu3 %vm130_vm1, %v91_v46 }
  0xb2   :  { %381 = vmatmul.msk.f32.gmra.mxu3 %vm130_vm1, %v92_v51 }
 0x11d   :  { %v160_v54 = vpop.f32.mrf.mxu3 }
 0x11e   :  { %vm201_vm2 = vcmp.gt.f32.partialorder %v160_v54, 0.0  ;;  %v205_v55 = vmul.f32 0.01, %v160_v54 }
 0x120   :  { %v209_v56 = vsel %vm201_vm2, %v160_v54, %v205_v55 }
 0x121   :  { %382 = vmatmul.msk.f32.vlgmr.msra.gmra.mxu2 %vm214_vm3, %v209_v56 }
 0x125   :  { %v163_v57 = vpop.f32.mrf.mxu3 }
 0x126   :  { %vm202_vm4 = vcmp.gt.f32.partialorder %v163_v57, 0.0  ;;  %v206_v58 = vmul.f32 0.01, %v163_v57 }
 0x128   :  { %v210_v59 = vsel %vm202_vm4, %v163_v57, %v206_v58 }
 0x129   :  { %383 = vmatmul.msk.f32.gmra.mxu2 %vm214_vm3, %v210_v59 }
 0x12d   :  { %v195_v60 = vpop.f32.mrf.mxu3 }
 0x12e   :  { %vm203_vm5 = vcmp.gt.f32.partialorder %v195_v60, 0.0  ;;  %v207_v61 = vmul.f32 0.01, %v195_v60 }
 0x130   :  { %v211_v62 = vsel %vm203_vm5, %v195_v60, %v207_v61 }
 0x131   :  { %384 = vmatmul.msk.f32.gmra.mxu2 %vm214_vm3, %v211_v62 }
 0x135   :  { %v198_v63 = vpop.f32.mrf.mxu3 }
 0x136   :  { %vm204_vm6 = vcmp.gt.f32.partialorder %v198_v63, 0.0  ;;  %v208_v0 = vmul.f32 0.01, %v198_v63 }
 0x138   :  { %v212_v1 = vsel %vm204_vm6, %v198_v63, %v208_v0 }
 0x139   :  { %385 = vmatmul.msk.f32.gmra.mxu2 %vm214_vm3, %v212_v1 }
 0x1a4   :  { %v244_v3 = vpop.f32.mrf.mxu2 }
 0x1a5   :  { %v245_v4 = vadd.f32 %v393_v2, %v244_v3 }
 0x1a7   :  { %v386_v5 = vclamps-f32 %v245_v4, 10.0 }
 0x1a9   :  { %v264_v6 = vmul.f32 1.442695, %v386_v5 }
 0x1ab   :  { %394 = vpow2.f32 %v264_v6 }
 0x1ac   :  { %v247_v7 = vpop.f32.mrf.mxu2 }
 0x1ad   :  { %v248_v8 = vadd.f32 %v393_v2, %v247_v7 }
 0x1af   :  { %v387_v9 = vclamps-f32 %v248_v8, 10.0 }
 0x1b1   :  { %v395_v10 = vpop.eup %394  ;;  %v266_v11 = vmul.f32 1.442695, %v387_v9 }
 0x1b2   :  { %v272_v12 = vsel %vm214_vm3, %v395_v10, 0.0 }
 0x1b3   :  { %396 = vpow2.f32 %v266_v11  ;;  %273 = vadd.xlane.f32.xlu0 %v272_v12 }
 0x1b4   :  { %v250_v13 = vpop.f32.mrf.mxu2 }
 0x1b5   :  { %v251_v14 = vadd.f32 %v393_v2, %v250_v13 }
 0x1b7   :  { %v388_v15 = vclamps-f32 %v251_v14, 10.0 }
 0x1b9   :  { %v397_v16 = vpop.eup %396  ;;  %v268_v17 = vmul.f32 1.442695, %v388_v15 }
 0x1ba   :  { %v275_v18 = vsel %vm214_vm3, %v397_v16, 0.0 }
 0x1bb   :  { %398 = vpow2.f32 %v268_v17  ;;  %276 = vadd.xlane.f32.xlu0 %v275_v18 }
 0x1bc   :  { %v253_v19 = vpop.f32.mrf.mxu2 }
 0x1bd   :  { %v254_v20 = vadd.f32 %v393_v2, %v253_v19 }
 0x1bf   :  { %v389_v21 = vclamps-f32 %v254_v20, 10.0 }
 0x1c1   :  { %v569_v22 = vpop.eup %398  ;;  %v270_v23 = vmul.f32 1.442695, %v389_v21 }
 0x1c2   :  { %v278_v24 = vsel %vm214_vm3, %v569_v22, 0.0 }
 0x1c3   :  { %400 = vpow2.f32 %v270_v23  ;;  %279 = vadd.xlane.f32.xlu1 %v278_v24 }
 0x1c9   :  { %v573_v25 = vpop.eup %400 }
 0x1ca   :  { %v281_v26 = vsel %vm214_vm3, %v573_v25, 0.0 }
 0x1cb   :  { %282 = vadd.xlane.f32.xlu1 %v281_v26 }
 0x226   :  { %v274_v27 = vpop.xlane.xlu0 %273 }
 0x227   :  { %402 = vrcp.f32 %v274_v27  ;;  %v295_v32 = vand.u32 2147483648, %v274_v27  ;;  %v293_v34 = vand.u32 2147483647, %v274_v27  ;;  %vm289_vm8 = vweird.f32 %v274_v27 }
 0x229   :  { %v296_v37 = vor.u32 1.1754944e-38, %v295_v32  ;;  %vm294_vm10 = vcmp.eq.f32.partialorder %v293_v34, 8.507059e+37 }
 0x22d   :  { %v403_v28 = vpop.eup %402 }
 0x22e   :  { %v285_v29 = vmul.f32 %v403_v28, %v274_v27  ;;  %v277_v30 = vpop.xlane.xlu0 %276  ;;  %vm290_vm7 = vweird.f32 %v403_v28 }
 0x22f   :  { %404 = vrcp.f32 %v277_v30  ;;  %vm291_vm9 = vmor %vm289_vm8, %vm290_vm7  ;;  %v310_v44 = vand.u32 2147483648, %v277_v30  ;;  %v308_v46 = vand.u32 2147483647, %v277_v30  ;;  %vm304_vm12 = vweird.f32 %v277_v30 }
 0x230   :  { %v286_v31 = vsub.f32 1.0, %v285_v29 }
 0x231   :  { %v311_v49 = vor.u32 1.1754944e-38, %v310_v44  ;;  %vm309_vm14 = vcmp.eq.f32.partialorder %v308_v46, 8.507059e+37 }
 0x232   :  { %v287_v33 = vmul.f32 %v403_v28, %v286_v31 }
 0x234   :  { %v288_v35 = vadd.f32 %v403_v28, %v287_v33 }
 0x235   :  { %v405_v36 = vpop.eup %404 }
 0x236   :  { %v292_v38 = vsel %vm291_vm9, %v403_v28, %v288_v35  ;;  %v300_v39 = vmul.f32 %v405_v36, %v277_v30  ;;  %v280_v40 = vpop.xlane.xlu1 %279  ;;  %vm305_vm11 = vweird.f32 %v405_v36 }
 0x237   :  { %v297_v41 = vsel %vm294_vm10, %v296_v37, %v292_v38  ;;  %406 = vrcp.f32 %v280_v40  ;;  %vm306_vm13 = vmor %vm304_vm12, %vm305_vm11  ;;  %v325_v56 = vand.u32 2147483648, %v280_v40  ;;  %v323_v58 = vand.u32 2147483647, %v280_v40 }
 0x238   :  { %v298_v42 = vmul.f32 %v395_v10, %v297_v41  ;;  %v301_v43 = vsub.f32 1.0, %v300_v39  ;;  %vm319_vm0 = vweird.f32 %v280_v40 }
 0x239   :  { %v326_v61 = vor.u32 1.1754944e-38, %v325_v56  ;;  %vm324_vm2 = vcmp.eq.f32.partialorder %v323_v58, 8.507059e+37 }
 0x23a   :  { %344 = vst.msk [vmem:[#allocation2] sm:$0xff] %vm214_vm3, %v298_v42  ;;  %v302_v45 = vmul.f32 %v405_v36, %v301_v43 }
 0x23c   :  { %v303_v47 = vadd.f32 %v405_v36, %v302_v45 }
 0x23d   :  { %v407_v48 = vpop.eup %406 }
 0x23e   :  { %v307_v50 = vsel %vm306_vm13, %v405_v36, %v303_v47  ;;  %v315_v51 = vmul.f32 %v407_v48, %v280_v40  ;;  %v283_v52 = vpop.xlane.xlu1 %282  ;;  %vm320_vm15 = vweird.f32 %v407_v48 }
 0x23f   :  { %v312_v53 = vsel %vm309_vm14, %v311_v49, %v307_v50  ;;  %408 = vrcp.f32 %v283_v52  ;;  %vm321_vm1 = vmor %vm319_vm0, %vm320_vm15  ;;  %v340_v3 = vand.u32 2147483648, %v283_v52  ;;  %v338_v5 = vand.u32 2147483647, %v283_v52 }
 0x240   :  { %v313_v54 = vmul.f32 %v397_v16, %v312_v53  ;;  %v316_v55 = vsub.f32 1.0, %v315_v51  ;;  %vm334_vm5 = vweird.f32 %v283_v52 }
 0x241   :  { %v341_v7 = vor.u32 1.1754944e-38, %v340_v3  ;;  %vm339_vm7 = vcmp.eq.f32.partialorder %v338_v5, 8.507059e+37 }
 0x242   :  { %345 = vst.msk [vmem:[#allocation2 + $0x8] sm:$0xff] %vm214_vm3, %v313_v54  ;;  %v317_v57 = vmul.f32 %v407_v48, %v316_v55 }
 0x244   :  { %v318_v59 = vadd.f32 %v407_v48, %v317_v57 }
 0x245   :  { %v409_v60 = vpop.eup %408 }
 0x246   :  { %v322_v62 = vsel %vm321_vm1, %v407_v48, %v318_v59  ;;  %v330_v63 = vmul.f32 %v409_v60, %v283_v52  ;;  %vm335_vm4 = vweird.f32 %v409_v60 }
 0x247   :  { %v327_v0 = vsel %vm324_vm2, %v326_v61, %v322_v62  ;;  %vm336_vm6 = vmor %vm334_vm5, %vm335_vm4 }
 0x248   :  { %v328_v1 = vmul.f32 %v569_v22, %v327_v0  ;;  %v331_v2 = vsub.f32 1.0, %v330_v63 }
 0x24a   :  { %346 = vst.msk [vmem:[#allocation2 + $0x10] sm:$0xff] %vm214_vm3, %v328_v1  ;;  %v332_v4 = vmul.f32 %v409_v60, %v331_v2 }
 0x24c   :  { %v333_v6 = vadd.f32 %v409_v60, %v332_v4 }
 0x24e   :  { %v337_v8 = vsel %vm336_vm6, %v409_v60, %v333_v6 }
 0x24f   :  { %v342_v9 = vsel %vm339_vm7, %v341_v7, %v337_v8 }
 0x250   :  { %v343_v10 = vmul.f32 %v573_v25, %v342_v9 }
 0x252   :  { %347 = vst.msk [vmem:[#allocation2 + $0x18] sm:$0xff] %vm214_vm3, %v343_v10 }
 0x253   :  { %360 = dma.vmem_to_hbm [thread:$0]  %s353_s13, 512, %s355_s16, [#allocation3], %s437_s17, %s437_s17, %s438_s18  }
 0x254   :  { %434 = dma.done.wait [#allocation3], 512  }
 0x255   :  { %435 = vsyncadd [#allocation3], 4294966784 }
 0x256   :  { %365 = vsyncpa [#allocation3], 1 }

</bundles_post_ra>
